<compile_context>
chip_gen: v7x
topology: tpu7x:2x2x1
jax: 0.10.0
libtpu: 0.0.40
codegen_flags: <defaults>
</compile_context>

<pallas_src>
import jax
import jax.numpy as jnp
from jax.experimental import pallas as pl
from jax.experimental.pallas import tpu as pltpu

_LANE = 128      # vreg lane width — last dim of every tile is exactly this
_SUBLANE = 8     # vreg sublane count — tile rows are a multiple of this
_MAX_BLOCK_ROWS = 4096  # 4096 x 128 f32 = 2 MiB/tile; (in + out) x 2 buffers = 8 MiB
                        # -> fits the v5e scoped-VMEM default and leaves v7x headroom.


def _copy_kernel(x_ref, o_ref):
    # Pure pass-through of one lane-dense VMEM tile: the only binding
    # resources are HBM bandwidth and per-grid-step overhead, so no in-kernel
    # tuning (Buffered depth, op reordering) is worthwhile.
    o_ref[...] = x_ref[...]


def _is_multi_tensorcore_chip() -> bool:
    # v7x has 2 TensorCores per chip; v5e / v6e have 1.
    try:
        kind = jax.devices()[0].device_kind.lower()
    except Exception:
        return False
    return "v7" in kind


_MULTI_TC = _is_multi_tensorcore_chip()


def _pick_block_rows(rows: int, multi_tc: bool) -> int:
    """Block-row policy.  `rows` is always a multiple of 8 (caller pads)."""
    cap = min(rows, _MAX_BLOCK_ROWS)
    if not multi_tc:
        # Single TC (v5e/v6e): the grid is a sequential loop — one maximal
        # block avoids ~0.35 us of per-step pipeline overhead per extra step.
        if rows <= _MAX_BLOCK_ROWS:
            return rows
        best = None
        for cand in range(_SUBLANE, cap + 1, _SUBLANE):
            if rows % cand == 0:
                best = cand
        return best if best is not None else rows
    # v7x (2 TCs): prefer >=2 grid steps so both cores issue DMA, but keep each
    # step as large as the VMEM-friendly cap allows.
    best = None
    fallback = None
    for cand in range(_SUBLANE, cap + 1, _SUBLANE):
        if rows % cand == 0:
            fallback = cand
            if rows // cand >= 2:
                best = cand
    if best is not None:
        return best
    return fallback if fallback is not None else rows


@jax.jit
def pallas_identity(x: jax.Array) -> jax.Array:
    """Lane-dense, tiled Pallas copy of `x` (demonstration kernel only)."""
    orig_shape = x.shape
    n = x.size
    flat = x.reshape(-1)

    # Pad the flat buffer up to a whole number of (8, 128) vregs so the kernel
    # always sees a lane-dense slab with rows % 8 == 0 (full-width stores).
    granule = _SUBLANE * _LANE
    padded = ((n + granule - 1) // granule) * granule
    needs_pad = padded != n
    if needs_pad:
        flat = jnp.pad(flat, (0, padded - n))
    x2 = flat.reshape(-1, _LANE)
    rows, cols = x2.shape

    block_rows = _pick_block_rows(rows, _MULTI_TC)
    grid = (rows // block_rows,)

    out2 = pl.pallas_call(
        _copy_kernel,
        out_shape=jax.ShapeDtypeStruct((rows, cols), x2.dtype),
        grid_spec=pltpu.PrefetchScalarGridSpec(
            num_scalar_prefetch=0,
            grid=grid,
            in_specs=[pl.BlockSpec((block_rows, cols), lambda i: (i, 0))],
            out_specs=pl.BlockSpec((block_rows, cols), lambda i: (i, 0)),
        ),
        compiler_params=pltpu.CompilerParams(
            dimension_semantics=("parallel",),
        ),
    )(x2)

    out_flat = out2.reshape(-1)
    if needs_pad:
        out_flat = out_flat[:n]
    return out_flat.reshape(orig_shape)


class LSTM:
    """JAX mirror of the (empty) PyTorch LSTM module.

    forward() performs no tensor work and launches no kernel — identical to
    the reference semantics and the fastest possible implementation.
    """

    def __init__(self):
        # Reference __init__ defines no parameters.
        self.logits = None
        self.loss = None

    def forward(self):
        self.logits = None
        self.loss = None
        return self

    __call__ = forward


if __name__ == "__main__":
    # Deterministic dummy input — only used to exercise the demonstration
    # Pallas kernel; the module's forward itself consumes no tensors.
    key = jax.random.PRNGKey(0)
    x = jax.random.normal(key, (2, 4, 16, 16), dtype=jnp.float32)

    # Exercise the Pallas copy path once and block on it.
    y = pallas_identity(x)
    jax.block_until_ready(y)
    assert y.shape == x.shape and y.dtype == x.dtype
    assert bool(jnp.allclose(y, x))

    # Run the module forward with the reference semantics.
    model = LSTM()
    result = model()
    assert result is model
    assert result.logits is None
    assert result.loss is None

    print("KERNEL_OK")
</pallas_src>

<mosaic_0001>
module attributes {stable_mosaic.version = 11 : i64} {
  func.func @_copy_kernel(%arg0: i32, %arg1: memref<16x128xf32, #tpu.memory_space<vmem>>, %arg2: memref<16x128xf32, #tpu.memory_space<vmem>>) attributes {dimension_semantics = [#tpu.dimension_semantics<parallel>], iteration_bounds = array<i64: 1>, scalar_prefetch = 0 : i64, scratch_operands = 0 : i64, tpu.core_type = #tpu.core_type<tc>, window_params = [{transform_indices = @transform_0, window_bounds = array<i64: 16, 128>}, {transform_indices = @transform_1, window_bounds = array<i64: 16, 128>}]} {
    %c0 = arith.constant 0 : index
    %c0_0 = arith.constant 0 : index
    %0 = vector.load %arg1[%c0, %c0_0] : memref<16x128xf32, #tpu.memory_space<vmem>>, vector<16x128xf32>
    %c0_1 = arith.constant 0 : index
    %c0_2 = arith.constant 0 : index
    %1 = vector.load %arg2[%c0_1, %c0_2] : memref<16x128xf32, #tpu.memory_space<vmem>>, vector<16x128xf32>
    tpu.vector_store %arg2[%c0_1, %c0_2], %0 {strides = array<i32>} : memref<16x128xf32, #tpu.memory_space<vmem>>, vector<16x128xf32>,
    return
  }
  func.func @transform_0(%arg0: i32) -> (i32, i32) {
    %c0_i32 = arith.constant 0 : i32
    %c0_i32_0 = arith.constant 0 : i32
    return %arg0, %c0_i32 : i32, i32
  }
  func.func @transform_1(%arg0: i32) -> (i32, i32) {
    %c0_i32 = arith.constant 0 : i32
    %c0_i32_0 = arith.constant 0 : i32
    return %arg0, %c0_i32 : i32, i32
  }
}

</mosaic_0001>

<bundles_post_ra>
// kernel: pallas_identity.1
= control target key start
LH: loop header
LB: loop body
LE: loop exit
PB: predicated region body
PF: predicated region fallthrough
CT: control target
= control target key end

     0   :  { %s38_s0 = inlined_call_operand.vmem [shape: f32[16,128], index: 0, kind: input, shape index: {}]   ;;  %s39_s1 = inlined_call_operand.vmem [shape: f32[16,128], index: 1, kind: output, shape index: {}]  }
   0x1   :  { %v8_v0 = vld [vmem:[%s38_s0] sm:$0xff]  ;;  %v9_v1 = vld [vmem:[%s38_s0 + $0x8] sm:$0xff] }
   0x2   :  { %10 = vst [vmem:[%s39_s1] sm:$0xff] %v8_v0  ;;  %11 = vst [vmem:[%s39_s1 + $0x8] sm:$0xff] %v9_v1 }

</bundles_post_ra>
